<compile_context>
chip_gen: v7x
topology: tpu7x:2x2x1
jax: 0.10.0
libtpu: 0.0.40
codegen_flags: <defaults>
</compile_context>

<pallas_src>
import functools

import jax
import jax.numpy as jnp
from jax.experimental import pallas as pl
from jax.experimental.pallas import tpu as pltpu

ABITS = 4  # abits=[4]; num_bits = abits[0]

_LANE_CANDIDATES = (4096, 2048, 1024, 512, 256, 128)


def _fake_int_add_kernel(scale_ref, x_ref, y_ref, o_ref, *, num_bits):
    # scale_ref: (1,) f32 in SMEM.  x_ref/y_ref/o_ref: (bm, LW) f32 tiles in VMEM.
    s = scale_ref[0]
    clip_val = (2.0 ** num_bits - 1.0) * s

    x = x_ref[...]
    y = y_ref[...]

    # True divide (not x * (1/s)): keeps floor() exact at quantization
    # boundaries; the kernel is memory-bound so the divide is free.
    xq = jnp.floor(jnp.clip(x, 0.0, clip_val) / s) * s
    yq = jnp.floor(jnp.clip(y, 0.0, clip_val) / s) * s

    o_ref[...] = xq + yq


def _vmem_capacity_bytes():
    try:
        return int(pltpu.get_tpu_info().vmem_capacity_bytes)
    except Exception:
        return 64 << 20  # conservative fallback (v7x per-TC VMEM)


def _choose_layout(total, vmem_capacity):
    """Pick (pad, rows, lane_width, block_rows) for a flat element count."""
    # Pad the flat length to a multiple of 128 only if needed (fallback path;
    # adds one extra copy of the operands, but keeps stores unmasked).
    pad = 0 if total % 128 == 0 else 128 - (total % 128)
    padded = total + pad

    lane_width = 128
    for cand in _LANE_CANDIDATES:
        if padded % cand == 0:
            lane_width = cand
            break
    rows = padded // lane_width

    # Per-operand block byte target from the per-generation VMEM budget:
    # 3 operands x 2 pipeline buffers x block must stay well under the limit.
    big_vmem = vmem_capacity >= (100 << 20)          # v5e/v6e: 128 MiB
    target_bytes = (4 << 20) if big_vmem else (2 << 20)  # v7x: 64 MiB

    bytes_per_row = lane_width * 4
    block_rows = max(8, (target_bytes // bytes_per_row) // 8 * 8)

    # Keep at least 2 grid programs when rows allow it (v7x has 2 TCs).
    if rows >= 16:
        block_rows = max(8, min(block_rows, (rows // 2) // 8 * 8))

    if block_rows >= rows:
        block_rows = rows  # full-extent block is always legal

    return pad, rows, lane_width, block_rows


def fake_int_add(act_x, act_y, act_scale, *, abits=ABITS):
    """act_x, act_y: float32 arrays of identical shape (e.g. NCHW).
    act_scale: (1,) float32."""
    assert act_x.shape == act_y.shape
    orig_shape = act_x.shape
    total = 1
    for d in orig_shape:
        total *= int(d)

    vmem_cap = _vmem_capacity_bytes()
    pad, rows, lane_width, block_rows = _choose_layout(total, vmem_cap)

    x_flat = act_x.reshape(-1)
    y_flat = act_y.reshape(-1)
    if pad:
        x_flat = jnp.pad(x_flat, (0, pad))
        y_flat = jnp.pad(y_flat, (0, pad))
    x2 = x_flat.reshape(rows, lane_width)
    y2 = y_flat.reshape(rows, lane_width)

    grid = (pl.cdiv(rows, block_rows),)
    kernel = functools.partial(_fake_int_add_kernel, num_bits=abits)

    # VMEM limit with headroom per generation (v7x physical is only 64 MiB).
    vmem_limit = (96 << 20) if vmem_cap >= (100 << 20) else (48 << 20)

    out2 = pl.pallas_call(
        kernel,
        out_shape=jax.ShapeDtypeStruct((rows, lane_width), act_x.dtype),
        grid_spec=pltpu.PrefetchScalarGridSpec(
            num_scalar_prefetch=0,
            grid=grid,
            in_specs=[
                pl.BlockSpec(memory_space=pltpu.SMEM),                    # act_scale (1,)
                pl.BlockSpec((block_rows, lane_width), lambda i: (i, 0)),  # x tile
                pl.BlockSpec((block_rows, lane_width), lambda i: (i, 0)),  # y tile
            ],
            out_specs=pl.BlockSpec((block_rows, lane_width), lambda i: (i, 0)),
        ),
        compiler_params=pltpu.CompilerParams(
            dimension_semantics=("parallel",),
            vmem_limit_bytes=vmem_limit,
        ),
    )(jnp.asarray(act_scale, jnp.float32).reshape(1), x2, y2)

    out_flat = out2.reshape(-1)
    if pad:
        out_flat = out_flat[:total]
    return out_flat.reshape(orig_shape)


def fake_int_add_ref(act_x, act_y, act_scale, *, abits=ABITS):
    """Pure-JAX reference mirroring the PyTorch forward."""
    s = act_scale.reshape(-1)[0]
    clip_val = (2.0 ** abits - 1.0) * s

    def q(v):
        return jnp.floor(jnp.clip(v, 0.0, clip_val) / s) * s

    return q(act_x) + q(act_y)


if __name__ == "__main__":
    key = jax.random.PRNGKey(0)

    # Deterministic "parameter": s_x_fakeint (shape (1,) like the torch tensor).
    act_scale = jnp.array([0.1], dtype=jnp.float32)

    test_shapes = [
        (2, 4, 16, 16),   # small NCHW, total divisible by 128
        (2, 8, 56, 56),   # exercises multi-block tiling path
        (1, 3, 7, 7),     # total not divisible by 128 -> pad fallback path
    ]

    for shape in test_shapes:
        kx, ky, key = jax.random.split(key, 3)
        act_x = jax.random.normal(kx, shape, dtype=jnp.float32)
        act_y = jax.random.normal(ky, shape, dtype=jnp.float32)

        out = fake_int_add(act_x, act_y, act_scale)
        out = jax.block_until_ready(out)

        ref = fake_int_add_ref(act_x, act_y, act_scale)
        assert out.shape == shape
        assert jnp.allclose(out, ref, atol=1e-6), f"mismatch vs reference at {shape}"

    print("KERNEL_OK")
</pallas_src>

<mosaic_0001>
module attributes {stable_mosaic.version = 11 : i64} {
  func.func @_fake_int_add_kernel(%arg0: i32, %arg1: memref<1xf32, #tpu.memory_space<smem>>, %arg2: memref<1x2048xf32, #tpu.memory_space<vmem>>, %arg3: memref<1x2048xf32, #tpu.memory_space<vmem>>, %arg4: memref<1x2048xf32, #tpu.memory_space<vmem>>) attributes {dimension_semantics = [#tpu.dimension_semantics<parallel>], iteration_bounds = array<i64: 1>, scalar_prefetch = 0 : i64, scratch_operands = 0 : i64, tpu.core_type = #tpu.core_type<tc>, window_params = [{transform_indices = @transform_0, window_bounds = array<i64: 1>}, {transform_indices = @transform_1, window_bounds = array<i64: 1, 2048>}, {transform_indices = @transform_2, window_bounds = array<i64: 1, 2048>}, {transform_indices = @transform_3, window_bounds = array<i64: 1, 2048>}]} {
    %c0 = arith.constant 0 : index
    %0 = memref.load %arg1[%c0] : memref<1xf32, #tpu.memory_space<smem>>
    %cst = arith.constant 1.500000e+01 : f32
    %1 = arith.mulf %cst, %0 : f32
    %c0_0 = arith.constant 0 : index
    %c0_1 = arith.constant 0 : index
    %2 = vector.load %arg2[%c0_0, %c0_1] : memref<1x2048xf32, #tpu.memory_space<vmem>>, vector<1x2048xf32>
    %c0_2 = arith.constant 0 : index
    %c0_3 = arith.constant 0 : index
    %3 = vector.load %arg3[%c0_2, %c0_3] : memref<1x2048xf32, #tpu.memory_space<vmem>>, vector<1x2048xf32>
    %cst_4 = arith.constant 0.000000e+00 : f32
    %4 = vector.broadcast %cst_4 : f32 to vector<1x2048xf32>
    %5 = arith.maximumf %4, %2 : vector<1x2048xf32>
    %6 = vector.broadcast %1 : f32 to vector<1x2048xf32>
    %7 = arith.minimumf %6, %5 : vector<1x2048xf32>
    %8 = vector.broadcast %0 : f32 to vector<1x2048xf32>
    %9 = arith.divf %7, %8 : vector<1x2048xf32>
    %10 = math.floor %9 : vector<1x2048xf32>
    %11 = vector.broadcast %0 : f32 to vector<1x2048xf32>
    %12 = arith.mulf %10, %11 : vector<1x2048xf32>
    %cst_5 = arith.constant 0.000000e+00 : f32
    %13 = vector.broadcast %cst_5 : f32 to vector<1x2048xf32>
    %14 = arith.maximumf %13, %3 : vector<1x2048xf32>
    %15 = vector.broadcast %1 : f32 to vector<1x2048xf32>
    %16 = arith.minimumf %15, %14 : vector<1x2048xf32>
    %17 = vector.broadcast %0 : f32 to vector<1x2048xf32>
    %18 = arith.divf %16, %17 : vector<1x2048xf32>
    %19 = math.floor %18 : vector<1x2048xf32>
    %20 = vector.broadcast %0 : f32 to vector<1x2048xf32>
    %21 = arith.mulf %19, %20 : vector<1x2048xf32>
    %22 = arith.addf %12, %21 : vector<1x2048xf32>
    %c0_6 = arith.constant 0 : index
    %c0_7 = arith.constant 0 : index
    %23 = vector.load %arg4[%c0_6, %c0_7] : memref<1x2048xf32, #tpu.memory_space<vmem>>, vector<1x2048xf32>
    tpu.vector_store %arg4[%c0_6, %c0_7], %22 {strides = array<i32>} : memref<1x2048xf32, #tpu.memory_space<vmem>>, vector<1x2048xf32>,
    return
  }
  func.func @transform_0(%arg0: i32) -> i32 {
    %c0_i32 = arith.constant 0 : i32
    %c0_i32_0 = arith.constant 0 : i32
    return %c0_i32 : i32
  }
  func.func @transform_1(%arg0: i32) -> (i32, i32) {
    %c0_i32 = arith.constant 0 : i32
    %c0_i32_0 = arith.constant 0 : i32
    return %arg0, %c0_i32 : i32, i32
  }
  func.func @transform_2(%arg0: i32) -> (i32, i32) {
    %c0_i32 = arith.constant 0 : i32
    %c0_i32_0 = arith.constant 0 : i32
    return %arg0, %c0_i32 : i32, i32
  }
  func.func @transform_3(%arg0: i32) -> (i32, i32) {
    %c0_i32 = arith.constant 0 : i32
    %c0_i32_0 = arith.constant 0 : i32
    return %arg0, %c0_i32 : i32, i32
  }
}

</mosaic_0001>

<bundles_post_ra>
// kernel: tpu_custom_call.1
= control target key start
LH: loop header
LB: loop body
LE: loop exit
PB: predicated region body
PF: predicated region fallthrough
CT: control target
= control target key end

     0   :  { %9 = vsyncpa [#allocation4], 0  ;;  %s231_s0 = inlined_call_operand.<no memory space> [shape: f32[1], index: 0, kind: input, shape index: {}]   ;;  %s232_s1 = inlined_call_operand.hbm [shape: f32[1,2048], index: 1, kind: input, shape index: {}]   ;;  %s233_s2 = inlined_call_operand.hbm [shape: f32[1,2048], index: 2, kind: input, shape index: {}]   ;;  %s234_s3 = inlined_call_operand.hbm [shape: f32[1,2048], index: 3, kind: output, shape index: {}]  }
   0x1   :  { %10 = vsyncpa [#allocation7], 0 }
   0x2   :  { %11 = vsyncpa [#allocation5], 0  ;;  %s166_s12 = smov [#allocation3]   ;;  %s167_s14 = smov [#allocation6]  }
   0x3   :  { %s20_s13 = sshll.u32 %s166_s12, 4  ;;  %s30_s15 = sshll.u32 %s167_s14, 4  ;;  %s21_s13 = int_to_ptr.vmem [resolvable:$true] %s20_s13  ;;  %s31_s15 = int_to_ptr.vmem [resolvable:$true] %s30_s15 }
   0x4   :  { %s94_s18 = scalar_lea.hbm %s232_s1, 256 }
   0x5   :  { %p95_p0 = scmp.ne.s32.totalorder %s232_s1, %s94_s18  ;;  %p98_p1 = scmp.lt.u32.totalorder %s94_s18, %s232_s1 }
   0x7   :  { %p100_p2 = pnand %p98_p1, %p95_p0 }
   0x9   :  { %103 = shalt.err (!%p100_p2)
}
   0xa   :  { %s104_s23 = scalar_lea.vmem %s21_s13, 256  ;;  %p109_p4 = scmp.lt.s32.totalorder %s21_s13, %s21_s13 }
   0xb   :  { %p105_p3 = scmp.ne.s32.totalorder %s21_s13, %s104_s23  ;;  %p110_p5 = scmp.lt.s32.totalorder %s104_s23, %s104_s23 }
   0xd   :  { %p111_p6 = por %p110_p5, %p109_p4 }
   0xf   :  { %p112_p7 = pnand %p111_p6, %p105_p3 }
  0x11   :  { %115 = shalt.err (!%p112_p7)
}
  0x12   :  { %23 = dma.hbm_to_vmem [thread:$0]  %s232_s1, 256, %s21_s13, [#allocation4]  }
  0x13   :  { %s116_s28 = scalar_lea.hbm %s233_s2, 256 }
  0x14   :  { %p117_p8 = scmp.ne.s32.totalorder %s233_s2, %s116_s28  ;;  %p120_p9 = scmp.lt.u32.totalorder %s116_s28, %s233_s2 }
  0x16   :  { %p122_p10 = pnand %p120_p9, %p117_p8 }
  0x18   :  { %125 = shalt.err (!%p122_p10)
}
  0x19   :  { %s126_s6 = scalar_lea.vmem %s31_s15, 256  ;;  %p131_p12 = scmp.lt.s32.totalorder %s31_s15, %s31_s15 }
  0x1a   :  { %p127_p11 = scmp.ne.s32.totalorder %s31_s15, %s126_s6  ;;  %p132_p13 = scmp.lt.s32.totalorder %s126_s6, %s126_s6 }
  0x1c   :  { %p133_p0 = por %p132_p13, %p131_p12 }
  0x1e   :  { %p134_p1 = pnand %p133_p0, %p127_p11 }
  0x20   :  { %137 = shalt.err (!%p134_p1)
}
  0x21   :  { %33 = dma.hbm_to_vmem [thread:$0]  %s233_s2, 256, %s31_s15, [#allocation7]  }
  0x22   :  { %160 = dma.done.wait [#allocation4], 256  }
  0x23   :  { %161 = vsyncadd [#allocation4], 4294967040 }
  0x24   :  { %162 = dma.done.wait [#allocation7], 256  }
  0x25   :  { %163 = vsyncadd [#allocation7], 4294967040  ;;  %v51_v0 = vstv %s231_s0  ;;  %s41_s12 = smul.f32 15.0, %s231_s0  ;;  %v42_v1 = vld [vmem:[#allocation3] sm:$0xff]  ;;  %v44_v2 = vld [vmem:[#allocation6] sm:$0xff]  ;;  %s168_s0 = smov [#allocation8]  }
  0x26   :  { %92 = vrcp.f32 %v51_v0  ;;  %v43_v4 = vld [vmem:[#allocation3 + $0x8] sm:$0xff]  ;;  %v46_v5 = vmax.f32 %v42_v1, 0.0  ;;  %v59_v6 = vmax.f32 %v44_v2, 0.0  ;;  %v45_v7 = vld [vmem:[#allocation6 + $0x8] sm:$0xff]  ;;  %s79_s2 = sshll.u32 %s168_s0, 4  ;;  %s80_s2 = int_to_ptr.vmem [resolvable:$true] %s79_s2 }
  0x27   :  { %v48_v3 = vstv %s41_s12  ;;  %v47_v8 = vmax.f32 %v43_v4, 0.0  ;;  %v60_v9 = vmax.f32 %v45_v7, 0.0  ;;  %s138_s13 = scalar_lea.vmem %s80_s2, 256  ;;  %p143_p3 = scmp.lt.s32.totalorder %s80_s2, %s80_s2 }
  0x28   :  { %v49_v10 = vmin.f32 %v48_v3, %v46_v5  ;;  %v61_v11 = vmin.f32 %v48_v3, %v59_v6  ;;  %p139_p2 = scmp.ne.s32.totalorder %s80_s2, %s138_s13  ;;  %p144_p4 = scmp.lt.s32.totalorder %s138_s13, %s138_s13 }
  0x29   :  { %v50_v12 = vmin.f32 %v48_v3, %v47_v8  ;;  %v62_v14 = vmin.f32 %v48_v3, %v60_v9 }
  0x2a   :  { %p145_p5 = por %p144_p4, %p143_p3 }
  0x2c   :  { %p146_p6 = pnand %p145_p5, %p139_p2 }
  0x30   :  { %v93_v13 = vpop.eup %92 }
  0x31   :  { %v53_v15 = vmul.f32 %v93_v13, %v49_v10  ;;  %v63_v16 = vmul.f32 %v93_v13, %v61_v11  ;;  %v54_v17 = vmul.f32 %v93_v13, %v50_v12  ;;  %v64_v18 = vmul.f32 %v93_v13, %v62_v14 }
  0x33   :  { %v55_v19 = vfloor.f32 %v53_v15  ;;  %v65_v20 = vfloor.f32 %v63_v16  ;;  %v56_v21 = vfloor.f32 %v54_v17  ;;  %v66_v22 = vfloor.f32 %v64_v18 }
  0x35   :  { %v57_v23 = vmul.f32 %v55_v19, %v51_v0  ;;  %v67_v24 = vmul.f32 %v65_v20, %v51_v0  ;;  %v58_v25 = vmul.f32 %v56_v21, %v51_v0  ;;  %v68_v26 = vmul.f32 %v66_v22, %v51_v0 }
  0x37   :  { %v69_v27 = vadd.f32 %v67_v24, %v57_v23  ;;  %v70_v28 = vadd.f32 %v68_v26, %v58_v25 }
  0x39   :  { %71 = vst [vmem:[#allocation8] sm:$0xff] %v69_v27  ;;  %72 = vst [vmem:[#allocation8 + $0x8] sm:$0xff] %v70_v28 }
  0x3a   :  { %149 = shalt.err (!%p146_p6)
}
  0x3b   :  { %s150_s16 = scalar_lea.hbm %s234_s3, 256 }
  0x3c   :  { %p151_p7 = scmp.ne.s32.totalorder %s234_s3, %s150_s16  ;;  %p154_p8 = scmp.lt.u32.totalorder %s150_s16, %s234_s3 }
  0x3e   :  { %p156_p9 = pnand %p154_p8, %p151_p7 }
  0x40   :  { %159 = shalt.err (!%p156_p9)
}
  0x41   :  { %82 = dma.vmem_to_hbm [thread:$0]  %s80_s2, 256, %s234_s3, [#allocation5]  }
  0x42   :  { %164 = dma.done.wait [#allocation5], 256  }
  0x43   :  { %165 = vsyncadd [#allocation5], 4294967040 }
  0x44   :  { %86 = vsyncpa [#allocation4], 1 }
  0x45   :  { %87 = vsyncpa [#allocation7], 1 }
  0x46   :  { %88 = vsyncpa [#allocation5], 1 }

</bundles_post_ra>
